<compile_context>
chip_gen: v7x
topology: tpu7x:2x2x1
jax: 0.10.0
libtpu: 0.0.40
codegen_flags: <defaults>
</compile_context>

<pallas_src>
import functools

import jax
import jax.numpy as jnp
from jax.experimental import pallas as pl
from jax.experimental.pallas import tpu as pltpu


def _cosface_kernel(labels_ref, logits_ref, out_ref, *, s, m, block_c):
    # labels_ref: (block_b, 1) int32 tile of the batch axis
    # logits_ref/out_ref: (block_b, block_c) float32 tile
    j = pl.program_id(1)
    labels = labels_ref[...]                                    # (block_b, 1)
    x = logits_ref[...]                                         # (block_b, block_c)
    col = jax.lax.broadcasted_iota(jnp.int32, x.shape, 1) + j * block_c
    # col >= 0 always, so rows with label == -1 can never match: no extra mask.
    is_target = col == labels                                   # broadcast compare
    out_ref[...] = jnp.where(is_target, x - m, x) * s


def _pick_block(dim, align, cap):
    """Largest multiple of `align` that is <= min(dim, cap); full dim if dim < align."""
    if dim < align:
        return dim
    return max(align, min(cap, (dim // align) * align))


def cosface(logits: jax.Array, labels: jax.Array, s: float = 64.0, m: float = 0.4):
    """logits: [B, C] float32, labels: [B] int32 (-1 means 'no target')."""
    B, C = logits.shape
    labels2d = labels.reshape(B, 1).astype(jnp.int32)

    # --- tile sizing ------------------------------------------------------
    # Batch tile: multiple of 8 sublanes (or full B if tiny), capped at 1024.
    block_b = _pick_block(B, 8, 1024)
    # Class tile: multiple of 128 lanes, capped at 1024 and by a conservative
    # VMEM working-set budget:  (in + out) * double-buffer * 4B * block_b * block_c.
    vmem_budget_bytes = 16 * 1024 * 1024
    bytes_per_col = 2 * 2 * 4 * block_b
    max_cols_by_budget = max(128, vmem_budget_bytes // bytes_per_col)
    block_c = _pick_block(C, 128, min(1024, max_cols_by_budget))

    grid = (pl.cdiv(B, block_b), pl.cdiv(C, block_c))
    kernel = functools.partial(_cosface_kernel, s=s, m=m, block_c=block_c)

    return pl.pallas_call(
        kernel,
        out_shape=jax.ShapeDtypeStruct((B, C), logits.dtype),
        grid_spec=pltpu.PrefetchScalarGridSpec(
            num_scalar_prefetch=0,
            grid=grid,
            in_specs=[
                pl.BlockSpec((block_b, 1), lambda i, j: (i, 0)),        # labels
                pl.BlockSpec((block_b, block_c), lambda i, j: (i, j)),  # logits tile
            ],
            out_specs=pl.BlockSpec((block_b, block_c), lambda i, j: (i, j)),
        ),
        # In-place semantics of the torch module: output aliases the logits input.
        input_output_aliases={1: 0},
        compiler_params=pltpu.CompilerParams(
            dimension_semantics=("parallel", "parallel"),
            vmem_limit_bytes=48 * 1024 * 1024,
        ),
    )(labels2d, logits)


def cosface_ref(logits, labels, s=64.0, m=0.4):
    B, C = logits.shape
    col = jnp.arange(C)[None, :]
    is_target = (labels[:, None] != -1) & (col == labels[:, None])
    return jnp.where(is_target, logits - m, logits) * s


if __name__ == "__main__":
    key = jax.random.PRNGKey(0)
    # Two small cases: lane-aligned C, and ragged B/C to exercise cdiv tiling.
    for (B, C) in [(8, 256), (12, 200)]:
        key, k1, k2 = jax.random.split(key, 3)
        logits = jax.random.normal(k1, (B, C), dtype=jnp.float32)
        labels = jax.random.randint(k2, (B,), 0, C, dtype=jnp.int32)
        # mark one sample as "ignore" (label == -1), matching the torch.where path
        labels = labels.at[3].set(-1)

        # Reference computed first so the aliased-output path can't disturb it.
        ref = cosface_ref(logits, labels, s=64.0, m=0.4)

        out = cosface(logits, labels, s=64.0, m=0.4)
        jax.block_until_ready(out)

        assert jnp.allclose(out, ref, atol=1e-5, rtol=1e-5), f"mismatch for B={B}, C={C}"

    print("KERNEL_OK")
</pallas_src>

<mosaic_0001>
module attributes {stable_mosaic.version = 11 : i64} {
  func.func @_cosface_kernel(%arg0: i32, %arg1: i32, %arg2: memref<8x1xi32, #tpu.memory_space<vmem>>, %arg3: memref<8x256xf32, #tpu.memory_space<vmem>>, %arg4: memref<8x256xf32, #tpu.memory_space<vmem>>) attributes {dimension_semantics = [#tpu.dimension_semantics<parallel>, #tpu.dimension_semantics<parallel>], iteration_bounds = array<i64: 1, 1>, scalar_prefetch = 0 : i64, scratch_operands = 0 : i64, tpu.core_type = #tpu.core_type<tc>, window_params = [{transform_indices = @transform_0, window_bounds = array<i64: 8, 1>}, {transform_indices = @transform_1, window_bounds = array<i64: 8, 256>}, {transform_indices = @transform_2, window_bounds = array<i64: 8, 256>}]} {
    %c0 = arith.constant 0 : index
    %c0_0 = arith.constant 0 : index
    %0 = vector.load %arg2[%c0, %c0_0] : memref<8x1xi32, #tpu.memory_space<vmem>>, vector<8x1xi32>
    %c0_1 = arith.constant 0 : index
    %c0_2 = arith.constant 0 : index
    %1 = vector.load %arg3[%c0_1, %c0_2] : memref<8x256xf32, #tpu.memory_space<vmem>>, vector<8x256xf32>
    %2 = tpu.iota {dimensions = array<i32: 1>} : vector<8x256xi32>
    %c256_i32 = arith.constant 256 : i32
    %3 = arith.muli %arg1, %c256_i32 : i32
    %4 = vector.broadcast %3 : i32 to vector<8x256xi32>
    %5 = arith.addi %2, %4 : vector<8x256xi32>
    %6 = vector.broadcast %0 : vector<8x1xi32> to vector<8x256xi32>
    %7 = arith.cmpi eq, %5, %6 : vector<8x256xi32>
    %cst = arith.constant 4.000000e-01 : f32
    %8 = vector.broadcast %cst : f32 to vector<8x256xf32>
    %9 = arith.subf %1, %8 : vector<8x256xf32>
    %10 = arith.select %7, %9, %1 : vector<8x256xi1>, vector<8x256xf32>
    %cst_3 = arith.constant 6.400000e+01 : f32
    %11 = vector.broadcast %cst_3 : f32 to vector<8x256xf32>
    %12 = arith.mulf %10, %11 : vector<8x256xf32>
    %c0_4 = arith.constant 0 : index
    %c0_5 = arith.constant 0 : index
    %13 = vector.load %arg4[%c0_4, %c0_5] : memref<8x256xf32, #tpu.memory_space<vmem>>, vector<8x256xf32>
    tpu.vector_store %arg4[%c0_4, %c0_5], %12 {strides = array<i32>} : memref<8x256xf32, #tpu.memory_space<vmem>>, vector<8x256xf32>,
    return
  }
  func.func @transform_0(%arg0: i32, %arg1: i32) -> (i32, i32) {
    %c0_i32 = arith.constant 0 : i32
    %c0_i32_0 = arith.constant 0 : i32
    return %arg0, %c0_i32 : i32, i32
  }
  func.func @transform_1(%arg0: i32, %arg1: i32) -> (i32, i32) {
    %c0_i32 = arith.constant 0 : i32
    return %arg0, %arg1 : i32, i32
  }
  func.func @transform_2(%arg0: i32, %arg1: i32) -> (i32, i32) {
    %c0_i32 = arith.constant 0 : i32
    return %arg0, %arg1 : i32, i32
  }
}

</mosaic_0001>

<bundles_post_ra>
// kernel: tpu_custom_call.1
= control target key start
LH: loop header
LB: loop body
LE: loop exit
PB: predicated region body
PF: predicated region fallthrough
CT: control target
= control target key end

     0   :  { %7 = vsyncpa [#allocation3], 0  ;;  %s161_s0 = inlined_call_operand.vmem [shape: s32[8,1], index: 0, kind: input, shape index: {}]   ;;  %s162_s1 = inlined_call_operand.hbm [shape: f32[8,256], index: 1, kind: input, shape index: {}, may-alias: {1,2}]   ;;  %s163_s2 = inlined_call_operand.hbm [shape: f32[8,256], index: 2, kind: output, shape index: {}, may-alias: {1,2}]  }
   0x1   :  { %8 = vsyncpa [#allocation4], 0  ;;  %s116_s9 = smov [#allocation2]   ;;  %s68_s13 = scalar_lea.hbm %s162_s1, 256 }
   0x2   :  { %s17_s10 = sshll.u32 %s116_s9, 4  ;;  %p69_p0 = scmp.ne.s32.totalorder %s162_s1, %s68_s13  ;;  %s18_s10 = int_to_ptr.vmem [resolvable:$true] %s17_s10 }
   0x3   :  { %p72_p1 = scmp.lt.u32.totalorder %s68_s13, %s162_s1 }
   0x5   :  { %p74_p2 = pnand %p72_p1, %p69_p0 }
   0x7   :  { %77 = shalt.err (!%p74_p2)
}
   0x8   :  { %s78_s18 = scalar_lea.vmem %s18_s10, 256  ;;  %p83_p4 = scmp.lt.s32.totalorder %s18_s10, %s18_s10 }
   0x9   :  { %p79_p3 = scmp.ne.s32.totalorder %s18_s10, %s78_s18  ;;  %p84_p5 = scmp.lt.s32.totalorder %s78_s18, %s78_s18 }
   0xb   :  { %p85_p6 = por %p84_p5, %p83_p4 }
   0xd   :  { %p86_p7 = pnand %p85_p6, %p79_p3 }
   0xf   :  { %89 = shalt.err (!%p86_p7)
}
  0x10   :  { %20 = dma.hbm_to_vmem [thread:$0]  %s162_s1, 256, %s18_s10, [#allocation3]  }
  0x11   :  { %112 = dma.done.wait [#allocation3], 256  }
  0x12   :  { %113 = vsyncadd [#allocation3], 4294967040  ;;  %v117_v0 = vmov 0   ;;  %v24_v1 = vld [vmem:[%s161_s0] sm:$0xff]  ;;  %v27_v2 = vlaneseq  ;;  %v26_v5 = vld [vmem:[#allocation2 + $0x8] sm:$0xff]  ;;  %s118_s23 = smov [#allocation5]  }
  0x13   :  { %67 = vset.pattern.permute.xlu0 %v117_v0  ;;  %v25_v4 = vld [vmem:[#allocation2] sm:$0xff]  ;;  %v63_v8 = vadd.f32 -0.4, %v26_v5  ;;  %s53_s24 = sshll.u32 %s118_s23, 4  ;;  %s54_s24 = int_to_ptr.vmem [resolvable:$true] %s53_s24 }
  0x14   :  { %35 = vperm.xlu0 %67, %v24_v1   ;;  %v28_v3 = vand.u32 127, %v27_v2  ;;  %v62_v7 = vadd.f32 -0.4, %v25_v4  ;;  %s90_s0 = scalar_lea.vmem %s54_s24, 256  ;;  %p95_p9 = scmp.lt.s32.totalorder %s54_s24, %s54_s24 }
  0x15   :  { %p91_p8 = scmp.ne.s32.totalorder %s54_s24, %s90_s0  ;;  %p96_p10 = scmp.lt.s32.totalorder %s90_s0, %s90_s0 }
  0x16   :  { %v29_v6 = vadd.s32 128, %v28_v3 }
  0x17   :  { %p97_p11 = por %p96_p10, %p95_p9 }
  0x19   :  { %p98_p12 = pnand %p97_p11, %p91_p8 }
  0x93   :  { %v36_v9 = vpop.permute.xlu0 %35 }
  0x94   :  { %vm37_vm0 = vcmp.eq.s32.totalorder %v28_v3, %v36_v9  ;;  %vm38_vm1 = vcmp.eq.s32.totalorder %v29_v6, %v36_v9 }
  0x95   :  { %v41_v10 = vsel %vm37_vm0, %v62_v7, %v25_v4  ;;  %v42_v11 = vsel %vm38_vm1, %v63_v8, %v26_v5 }
  0x96   :  { %v43_v12 = vmul.f32 64.0, %v41_v10  ;;  %v44_v13 = vmul.f32 64.0, %v42_v11 }
  0x98   :  { %45 = vst [vmem:[#allocation5] sm:$0xff] %v43_v12  ;;  %46 = vst [vmem:[#allocation5 + $0x8] sm:$0xff] %v44_v13 }
  0x99   :  { %101 = shalt.err (!%p98_p12)
}
  0x9a   :  { %s102_s26 = scalar_lea.hbm %s163_s2, 256 }
  0x9b   :  { %p103_p13 = scmp.ne.s32.totalorder %s163_s2, %s102_s26  ;;  %p106_p0 = scmp.lt.u32.totalorder %s102_s26, %s163_s2 }
  0x9d   :  { %p108_p1 = pnand %p106_p0, %p103_p13 }
  0x9f   :  { %111 = shalt.err (!%p108_p1)
}
  0xa0   :  { %56 = dma.vmem_to_hbm [thread:$0]  %s54_s24, 256, %s163_s2, [#allocation4]  }
  0xa1   :  { %114 = dma.done.wait [#allocation4], 256  }
  0xa2   :  { %115 = vsyncadd [#allocation4], 4294967040 }
  0xa3   :  { %60 = vsyncpa [#allocation3], 1 }
  0xa4   :  { %61 = vsyncpa [#allocation4], 1 }

</bundles_post_ra>
